<compile_context>
chip_gen: v7x
topology: tpu7x:2x2x1
jax: 0.10.0
libtpu: 0.0.40
codegen_flags: <defaults>
</compile_context>

<pallas_src>
import functools

import jax
import jax.numpy as jnp
from jax import lax
from jax.experimental import pallas as pl
from jax.experimental.pallas import tpu as pltpu


def _attn_head_kernel(x_ref, wq_ref, wk_ref, wv_ref, o_ref, *, causal, scale, B, T, H):
    # x_ref:  (B*T, C)  -- batch folded into the matmul M dimension
    # w*_ref: (C, H)    -- separate projection weights (no lane-offset slicing of a fused RHS)
    # o_ref:  (B*T, H)
    x = x_ref[...]

    # Three separate projections; each (B*T, H) result keeps its natural layout.
    q_all = jnp.dot(x, wq_ref[...], preferred_element_type=jnp.float32)
    k_all = jnp.dot(x, wk_ref[...], preferred_element_type=jnp.float32)
    v_all = jnp.dot(x, wv_ref[...], preferred_element_type=jnp.float32)

    if causal:
        # Built once per kernel invocation, shared across batches.
        row = lax.broadcasted_iota(jnp.int32, (T, T), 0)
        col = lax.broadcasted_iota(jnp.int32, (T, T), 1)
        causal_mask = row >= col  # lower-triangular (incl. diagonal)

    # B is tiny and known at trace time -> static unroll is fine.
    # TODO(synk): switch to lax.fori_loop(..., unroll=True) or a grid axis if B grows,
    #             to bound vreg live ranges.
    for b in range(B):
        rows = slice(b * T, (b + 1) * T)  # static, sublane-aligned (T == 8)
        q = q_all[rows, :]
        k = k_all[rows, :]
        v = v_all[rows, :]

        # q @ k^T without materializing a transpose: contract the head dims on the MXU.
        wei = lax.dot_general(
            q, k,
            dimension_numbers=(((1,), (1,)), ((), ())),
            preferred_element_type=jnp.float32,
        ) * scale                                                    # (T, T)

        if causal:
            # -inf sentinel is safe here: the causal diagonal guarantees every row has at
            # least one unmasked entry (use a finite sentinel if padding masks are added).
            wei = jnp.where(causal_mask, wei, -jnp.inf)
            m = jnp.max(wei, axis=-1, keepdims=True)
            e = jnp.exp(wei - m)
            wei = e / jnp.sum(e, axis=-1, keepdims=True)  # exact divide; EUP not the bottleneck
        # Non-causal path intentionally applies NO softmax (matches PyTorch control flow).

        # Dropout: identity (eval mode).
        out_b = jnp.dot(wei, v, preferred_element_type=jnp.float32)  # (T, H)
        # Direct, sublane-aligned store into the output ref (no concat / extra VMEM copy).
        o_ref[rows, :] = out_b.astype(o_ref.dtype)


@functools.partial(jax.jit, static_argnames=("causal",))
def self_attention_head(x, w_query, w_key, w_value, *, causal=True):
    """x: (B, T, C); w_*: (C, H) (transposed nn.Linear weights). Returns (B, T, H)."""
    B, T, C = x.shape
    H = w_query.shape[1]
    scale = float(C) ** (-0.5)  # matches `C ** (-0.5)` in the PyTorch module

    x_flat = x.reshape(B * T, C)

    kernel = functools.partial(
        _attn_head_kernel, causal=causal, scale=scale, B=B, T=T, H=H
    )

    # Whole problem fits comfortably in VMEM -> single gridless invocation with explicit
    # full-array VMEM residency (no per-step pipeline overhead, no weight revisits).
    vmem_spec = pl.BlockSpec(memory_space=pltpu.MemorySpace.VMEM)
    out_flat = pl.pallas_call(
        kernel,
        out_shape=jax.ShapeDtypeStruct((B * T, H), x.dtype),
        in_specs=[vmem_spec, vmem_spec, vmem_spec, vmem_spec],
        out_specs=vmem_spec,
    )(x_flat, w_query, w_key, w_value)

    return out_flat.reshape(B, T, H)


def _reference(x, w_query, w_key, w_value, causal):
    # Pure-JAX reference mirroring the PyTorch forward (including its quirks).
    B, T, C = x.shape
    q = x @ w_query
    k = x @ w_key
    v = x @ w_value
    wei = (q @ jnp.swapaxes(k, -2, -1)) * (C ** -0.5)
    if causal:
        tril = jnp.tril(jnp.ones((T, T), dtype=bool))
        wei = jnp.where(tril, wei, -jnp.inf)
        wei = jax.nn.softmax(wei, axis=-1)
    return wei @ v


if __name__ == "__main__":
    # Module hyperparameters (small, consistent with the forward):
    embedding_size = 32   # C
    sequence_len = 8      # T
    head_size = 16        # H
    batch = 2             # B
    dropout = 0.0         # identity in eval mode

    key = jax.random.PRNGKey(0)
    kx, kq, kk, kv = jax.random.split(key, 4)

    x = jax.random.normal(kx, (batch, sequence_len, embedding_size), dtype=jnp.float32)
    # nn.Linear(embedding_size, head_size, bias=False) weights, stored transposed as (C, H):
    w_query = jax.random.normal(kq, (embedding_size, head_size), dtype=jnp.float32) * 0.1
    w_key   = jax.random.normal(kk, (embedding_size, head_size), dtype=jnp.float32) * 0.1
    w_value = jax.random.normal(kv, (embedding_size, head_size), dtype=jnp.float32) * 0.1

    # Causal path (standard masked softmax attention).
    out_c = jax.block_until_ready(
        self_attention_head(x, w_query, w_key, w_value, causal=True)
    )
    ref_c = _reference(x, w_query, w_key, w_value, causal=True)
    assert out_c.shape == (batch, sequence_len, head_size)
    assert jnp.allclose(out_c, ref_c, atol=2e-3, rtol=2e-3), "causal mismatch vs reference"

    # Non-causal path (no softmax -- matches the PyTorch module's control flow).
    out_nc = jax.block_until_ready(
        self_attention_head(x, w_query, w_key, w_value, causal=False)
    )
    ref_nc = _reference(x, w_query, w_key, w_value, causal=False)
    assert out_nc.shape == (batch, sequence_len, head_size)
    assert jnp.allclose(out_nc, ref_nc, atol=2e-3, rtol=2e-3), "non-causal mismatch vs reference"

    print("KERNEL_OK")
</pallas_src>

<mosaic_0001>
module attributes {stable_mosaic.version = 11 : i64} {
  func.func @_attn_head_kernel(%arg0: memref<16x32xf32, #tpu.memory_space<vmem>>, %arg1: memref<32x16xf32, #tpu.memory_space<vmem>>, %arg2: memref<32x16xf32, #tpu.memory_space<vmem>>, %arg3: memref<32x16xf32, #tpu.memory_space<vmem>>, %arg4: memref<16x16xf32, #tpu.memory_space<vmem>>) attributes {dimension_semantics = [], scalar_prefetch = 0 : i64, scratch_operands = 0 : i64, tpu.core_type = #tpu.core_type<tc>} {
    %c0 = arith.constant 0 : index
    %c0_0 = arith.constant 0 : index
    %0 = vector.load %arg0[%c0, %c0_0] : memref<16x32xf32, #tpu.memory_space<vmem>>, vector<16x32xf32>
    %c0_1 = arith.constant 0 : index
    %c0_2 = arith.constant 0 : index
    %1 = vector.load %arg1[%c0_1, %c0_2] : memref<32x16xf32, #tpu.memory_space<vmem>>, vector<32x16xf32>
    %cst = arith.constant dense<0.000000e+00> : vector<16x16xf32>
    %2 = tpu.matmul %0, %1, %cst {dimension_numbers = #tpu.dot_dimension_numbers<[1], [0], [0], [1], [0, 0, 1, 1], [], []>} : vector<16x32xf32>, vector<32x16xf32>, vector<16x16xf32> -> vector<16x16xf32>
    %c0_3 = arith.constant 0 : index
    %c0_4 = arith.constant 0 : index
    %3 = vector.load %arg2[%c0_3, %c0_4] : memref<32x16xf32, #tpu.memory_space<vmem>>, vector<32x16xf32>
    %cst_5 = arith.constant dense<0.000000e+00> : vector<16x16xf32>
    %4 = tpu.matmul %0, %3, %cst_5 {dimension_numbers = #tpu.dot_dimension_numbers<[1], [0], [0], [1], [0, 0, 1, 1], [], []>} : vector<16x32xf32>, vector<32x16xf32>, vector<16x16xf32> -> vector<16x16xf32>
    %c0_6 = arith.constant 0 : index
    %c0_7 = arith.constant 0 : index
    %5 = vector.load %arg3[%c0_6, %c0_7] : memref<32x16xf32, #tpu.memory_space<vmem>>, vector<32x16xf32>
    %cst_8 = arith.constant dense<0.000000e+00> : vector<16x16xf32>
    %6 = tpu.matmul %0, %5, %cst_8 {dimension_numbers = #tpu.dot_dimension_numbers<[1], [0], [0], [1], [0, 0, 1, 1], [], []>} : vector<16x32xf32>, vector<32x16xf32>, vector<16x16xf32> -> vector<16x16xf32>
    %7 = tpu.iota {dimensions = array<i32: 0>} : vector<8x8xi32>
    %8 = tpu.iota {dimensions = array<i32: 1>} : vector<8x8xi32>
    %9 = arith.cmpi sge, %7, %8 : vector<8x8xi32>
    %10 = vector.extract_strided_slice %2 {offsets = [0, 0], sizes = [8, 16], strides = [1, 1]} : vector<16x16xf32> to vector<8x16xf32>
    %11 = vector.extract_strided_slice %4 {offsets = [0, 0], sizes = [8, 16], strides = [1, 1]} : vector<16x16xf32> to vector<8x16xf32>
    %12 = vector.extract_strided_slice %6 {offsets = [0, 0], sizes = [8, 16], strides = [1, 1]} : vector<16x16xf32> to vector<8x16xf32>
    %cst_9 = arith.constant dense<0.000000e+00> : vector<8x8xf32>
    %13 = tpu.matmul %10, %11, %cst_9 {dimension_numbers = #tpu.dot_dimension_numbers<[1], [1], [0], [0], [0, 0, 1, 0], [], []>} : vector<8x16xf32>, vector<8x16xf32>, vector<8x8xf32> -> vector<8x8xf32>
    %cst_10 = arith.constant 0.176776692 : f32
    %14 = vector.broadcast %cst_10 : f32 to vector<8x8xf32>
    %15 = arith.mulf %13, %14 : vector<8x8xf32>
    %cst_11 = arith.constant 0xFF800000 : f32
    %16 = vector.broadcast %cst_11 : f32 to vector<8x8xf32>
    %17 = arith.select %9, %15, %16 : vector<8x8xi1>, vector<8x8xf32>
    %cst_12 = arith.constant dense<0xFF800000> : vector<8xf32>
    %18 = vector.multi_reduction <maximumf>, %17, %cst_12 [1] : vector<8x8xf32> to vector<8xf32>
    %19 = vector.shape_cast %18 : vector<8xf32> to vector<8x1xf32>
    %20 = vector.broadcast %19 : vector<8x1xf32> to vector<8x8xf32>
    %21 = arith.subf %17, %20 : vector<8x8xf32>
    %22 = math.exp %21 : vector<8x8xf32>
    %cst_13 = arith.constant dense<0.000000e+00> : vector<8xf32>
    %23 = vector.multi_reduction <add>, %22, %cst_13 [1] : vector<8x8xf32> to vector<8xf32>
    %24 = vector.shape_cast %23 : vector<8xf32> to vector<8x1xf32>
    %25 = vector.broadcast %24 : vector<8x1xf32> to vector<8x8xf32>
    %26 = arith.divf %22, %25 : vector<8x8xf32>
    %cst_14 = arith.constant dense<0.000000e+00> : vector<8x16xf32>
    %27 = tpu.matmul %26, %12, %cst_14 {dimension_numbers = #tpu.dot_dimension_numbers<[1], [0], [0], [1], [0, 0, 1, 1], [], []>} : vector<8x8xf32>, vector<8x16xf32>, vector<8x16xf32> -> vector<8x16xf32>
    %c0_15 = arith.constant 0 : index
    %c0_16 = arith.constant 0 : index
    %28 = vector.load %arg4[%c0_15, %c0_16] : memref<16x16xf32, #tpu.memory_space<vmem>>, vector<8x16xf32>
    tpu.vector_store %arg4[%c0_15, %c0_16], %27 {strides = array<i32>} : memref<16x16xf32, #tpu.memory_space<vmem>>, vector<8x16xf32>,
    %29 = vector.extract_strided_slice %2 {offsets = [8, 0], sizes = [8, 16], strides = [1, 1]} : vector<16x16xf32> to vector<8x16xf32>
    %30 = vector.extract_strided_slice %4 {offsets = [8, 0], sizes = [8, 16], strides = [1, 1]} : vector<16x16xf32> to vector<8x16xf32>
    %31 = vector.extract_strided_slice %6 {offsets = [8, 0], sizes = [8, 16], strides = [1, 1]} : vector<16x16xf32> to vector<8x16xf32>
    %cst_17 = arith.constant dense<0.000000e+00> : vector<8x8xf32>
    %32 = tpu.matmul %29, %30, %cst_17 {dimension_numbers = #tpu.dot_dimension_numbers<[1], [1], [0], [0], [0, 0, 1, 0], [], []>} : vector<8x16xf32>, vector<8x16xf32>, vector<8x8xf32> -> vector<8x8xf32>
    %cst_18 = arith.constant 0.176776692 : f32
    %33 = vector.broadcast %cst_18 : f32 to vector<8x8xf32>
    %34 = arith.mulf %32, %33 : vector<8x8xf32>
    %cst_19 = arith.constant 0xFF800000 : f32
    %35 = vector.broadcast %cst_19 : f32 to vector<8x8xf32>
    %36 = arith.select %9, %34, %35 : vector<8x8xi1>, vector<8x8xf32>
    %cst_20 = arith.constant dense<0xFF800000> : vector<8xf32>
    %37 = vector.multi_reduction <maximumf>, %36, %cst_20 [1] : vector<8x8xf32> to vector<8xf32>
    %38 = vector.shape_cast %37 : vector<8xf32> to vector<8x1xf32>
    %39 = vector.broadcast %38 : vector<8x1xf32> to vector<8x8xf32>
    %40 = arith.subf %36, %39 : vector<8x8xf32>
    %41 = math.exp %40 : vector<8x8xf32>
    %cst_21 = arith.constant dense<0.000000e+00> : vector<8xf32>
    %42 = vector.multi_reduction <add>, %41, %cst_21 [1] : vector<8x8xf32> to vector<8xf32>
    %43 = vector.shape_cast %42 : vector<8xf32> to vector<8x1xf32>
    %44 = vector.broadcast %43 : vector<8x1xf32> to vector<8x8xf32>
    %45 = arith.divf %41, %44 : vector<8x8xf32>
    %cst_22 = arith.constant dense<0.000000e+00> : vector<8x16xf32>
    %46 = tpu.matmul %45, %31, %cst_22 {dimension_numbers = #tpu.dot_dimension_numbers<[1], [0], [0], [1], [0, 0, 1, 1], [], []>} : vector<8x8xf32>, vector<8x16xf32>, vector<8x16xf32> -> vector<8x16xf32>
    %c8 = arith.constant 8 : index
    %c0_23 = arith.constant 0 : index
    %47 = vector.load %arg4[%c8, %c0_23] : memref<16x16xf32, #tpu.memory_space<vmem>>, vector<8x16xf32>
    tpu.vector_store %arg4[%c8, %c0_23], %46 {strides = array<i32>} : memref<16x16xf32, #tpu.memory_space<vmem>>, vector<8x16xf32>,
    return
  }
}

</mosaic_0001>

<bundles_post_ra>
// kernel: self_attention_head.1
= control target key start
LH: loop header
LB: loop body
LE: loop exit
PB: predicated region body
PF: predicated region fallthrough
CT: control target
= control target key end

     0   :  { %vm24_vm0 = vcmask 261120   ;;  %s871_s0 = inlined_call_operand.vmem [shape: f32[16,32], index: 0, kind: input, shape index: {}]   ;;  %s872_s1 = inlined_call_operand.vmem [shape: f32[32,16], index: 1, kind: input, shape index: {}]   ;;  %s873_s2 = inlined_call_operand.vmem [shape: f32[32,16], index: 2, kind: input, shape index: {}]   ;;  %s874_s3 = inlined_call_operand.vmem [shape: f32[32,16], index: 3, kind: input, shape index: {}]   ;;  %s875_s4 = inlined_call_operand.hbm [shape: f32[16,16], index: 4, kind: output, shape index: {}]  }
   0x1   :  { %v106_v0 = vld [vmem:[%s873_s2] sm:$0xff]  ;;  %v107_v1 = vld [vmem:[%s873_s2 + $0x8] sm:$0xff]  ;;  %v108_v5 = vld [vmem:[%s873_s2 + $0x10] sm:$0xff] }
   0x2   :  { %v20_v2 = vld [vmem:[%s872_s1] sm:$0xff]  ;;  %v712_v3 = vpack.c.bf16 %v107_v1, %v106_v0  ;;  %v21_v4 = vld [vmem:[%s872_s1 + $0x8] sm:$0xff]  ;;  %v109_v6 = vld [vmem:[%s873_s2 + $0x18] sm:$0xff] }
   0x3   :  { %v704_v7 = vpack.c.bf16 %v21_v4, %v20_v2  ;;  %v716_v8 = vpack.c.bf16 %v109_v6, %v108_v5  ;;  %v22_v9 = vld [vmem:[%s872_s1 + $0x10] sm:$0xff]  ;;  %v23_v10 = vld [vmem:[%s872_s1 + $0x18] sm:$0xff]  ;;  %v18_v11 = vld [vmem:[%s871_s0] sm:$0xff] }
   0x4   :  { %713 = vmatprep.subr.bf16.mxu1 %v712_v3  ;;  %v708_v12 = vpack.c.bf16 %v23_v10, %v22_v9  ;;  %670 = vmatprep.mubr.msk.f32.mxu1 %vm24_vm0, %v18_v11  ;;  %v185_v13 = vld [vmem:[%s874_s3] sm:$0xff]  ;;  %v186_v14 = vld [vmem:[%s874_s3 + $0x8] sm:$0xff] }
   0x5   :  { %715 = vmatpush3.bf16.msra.mxu1 %v712_v3  ;;  %705 = vmatprep.subr.bf16.mxu0 %v704_v7 }
   0x6   :  { %9 = vsyncpa [#allocation3], 0  ;;  %707 = vmatpush3.bf16.msra.mxu0 %v704_v7  ;;  %717 = vmatprep.subr.bf16.mxu1 %v716_v8  ;;  %v720_v15 = vpack.c.bf16 %v186_v14, %v185_v13  ;;  %v187_v16 = vld [vmem:[%s874_s3 + $0x10] sm:$0xff]  ;;  %v188_v17 = vld [vmem:[%s874_s3 + $0x18] sm:$0xff]  ;;  %v765_v20 = vmov 0.0   ;;  %vm766_vm1 = vmmov 0   ;;  %v264_v27 = vlaneseq }
   0x7   :  { %709 = vmatprep.subr.bf16.mxu0 %v708_v12  ;;  %659 = vmatprep.mubr.msk.f32.mxu0 %vm24_vm0, %v18_v11  ;;  %v19_v18 = vld [vmem:[%s871_s0 + $0x8] sm:$0xff]  ;;  %v724_v19 = vpack.c.bf16 %v188_v17, %v187_v16  ;;  %vm269_vm2 = vcmask 130048   ;;  %vm348_vm4 = vcmask 64512   ;;  %s767_s0 = smov [#allocation2]  }
   0x8   :  { %v265_v28 = vshrl.u32 %v264_v27, 7  ;;  %v267_v29 = vand.u32 127, %v264_v27  ;;  %s602_s3 = sshll.u32 %s767_s0, 4  ;;  %s603_s3 = int_to_ptr.vmem [resolvable:$true] %s602_s3 }
   0x9   :  { %719 = vmatpush3.bf16.msra.mxu1 %v716_v8  ;;  %s741_s15 = scalar_lea.vmem %s603_s3, 256  ;;  %p746_p1 = scmp.lt.s32.totalorder %s603_s3, %s603_s3 }
   0xa   :  { %711 = vmatpush3.bf16.msra.mxu0 %v708_v12  ;;  %684 = vmatprep.subr.mxu1 %v765_v20  ;;  %vm268_vm3 = vcmp.ge.s32.totalorder %v265_v28, %v267_v29  ;;  %p742_p0 = scmp.ne.s32.totalorder %s603_s3, %s741_s15  ;;  %p747_p2 = scmp.lt.s32.totalorder %s741_s15, %s741_s15 }
   0xb   :  { %721 = vmatprep.subr.bf16.mxu0 %v720_v15 }
   0xc   :  { %671 = vmatmul.mubr.msk.f32.vlgmr.msra.gmra.mrb[0].mxu1 %vm24_vm0, %v19_v18  ;;  %p748_p3 = por %p747_p2, %p746_p1 }
   0xd   :  { %660 = vmatmul.mubr.msk.f32.vlgmr.msra.gmra.mrb[0].mxu0 %vm24_vm0, %v19_v18  ;;  %686 = vmatprep.mubr.msk.f32.mxu1 %vm766_vm1, %v765_v20 }
   0xe   :  { %723 = vmatpush3.bf16.msra.mxu0 %v720_v15  ;;  %681 = vmatprep.mubr.msk.f32.mxu0 %vm24_vm0, %v18_v11  ;;  %p749_p4 = pnand %p748_p3, %p742_p0 }
   0xf   :  { %725 = vmatprep.subr.bf16.mxu0 %v724_v19 }
  0x12   :  { %727 = vmatpush3.bf16.msra.mxu0 %v724_v19 }
  0x13   :  { %694 = vmatprep.subr.mxu0 %v765_v20 }
  0x15   :  { %682 = vmatmul.mubr.msk.f32.vlgmr.msra.gmra.mrb[2].mxu0 %vm24_vm0, %v19_v18 }
  0x16   :  { %696 = vmatprep.mubr.msk.f32.mxu0 %vm766_vm1, %v765_v20 }
  0xdf   :  { %v672_v21 = vpop.f32.mrb[0].mxu1 }
  0xe0   :  { %v176_v22 = vpop.f32.mrb[1].mxu1  ;;  %695 = vmatpush3.xpose.msk.msra.mxu0 %vm269_vm2, %v672_v21  ;;  %v661_v23 = vpop.f32.mrb[0].mxu0 }
  0xe1   :  { %685 = vmatpush3.xpose.msk.msra.mxu1 %vm269_vm2, %v176_v22  ;;  %v97_v24 = vpop.f32.mrb[1].mxu0 }
  0xe2   :  { %689 = vmatprep.subr.mxu1 %v765_v20 }
  0xe3   :  { %697 = vmatmul.mubr.msk.f32.vlgmr.msra.gmra.mrb[4].mxu0 %vm269_vm2, %v661_v23 }
  0xe4   :  { %687 = vmatmul.mubr.msk.f32.vlgmr.msra.gmra.mrb[2].mxu1 %vm269_vm2, %v97_v24 }
  0xe5   :  { %691 = vmatprep.mubr.msk.f32.mxu1 %vm766_vm1, %v765_v20 }
  0xe8   :  { %v683_v25 = vpop.f32.mrb[2].mxu0 }
  0xe9   :  { %v255_v26 = vpop.f32.mrb[3].mxu0 }
  0xea   :  { %690 = vmatpush3.msra.mxu1 %v255_v26 }
  0xeb   :  { %699 = vmatprep.subr.mxu1 %v765_v20 }
 0x1b6   :  { %v506_v30 = vpop.f32.mrb[4].mxu0 }
 0x1b7   :  { %v342_v31 = vpop.f32.mrb[2].mxu1  ;;  %v698_v32 = vpop.f32.mrb[5].mxu0  ;;  %v510_v33 = vmul.f32 0.17677669, %v506_v30 }
 0x1b8   :  { %v346_v34 = vmul.f32 0.17677669, %v342_v31  ;;  %v688_v35 = vpop.f32.mrb[3].mxu1 }
 0x1b9   :  { %v511_v38 = vsel %vm268_vm3, %v510_v33, -inf }
 0x1ba   :  { %v347_v36 = vsel %vm268_vm3, %v346_v34, -inf  ;;  %v512_v39 = vsel %vm348_vm4, %v511_v38, -inf }
 0x1bb   :  { %v349_v37 = vsel %vm348_vm4, %v347_v36, -inf }
 0x1bc   :  { %350 = vmax.xlane.f32.xlu0 %v349_v37 }
 0x1c0   :  { %513 = vmax.xlane.f32.xlu0 %v512_v39 }
 0x249   :  { %v351_v40 = vpop.xlane.xlu0 %350 }
 0x24a   :  { %v352_v41 = vsub.f32 %v347_v36, %v351_v40 }
 0x24c   :  { %v353_v42 = vmul.f32 1.442695, %v352_v41 }
 0x24d   :  { %v514_v43 = vpop.xlane.xlu0 %513 }
 0x24e   :  { %733 = vpow2.f32 %v353_v42  ;;  %v515_v44 = vsub.f32 %v511_v38, %v514_v43 }
 0x250   :  { %v516_v45 = vmul.f32 1.442695, %v515_v44 }
 0x252   :  { %735 = vpow2.f32 %v516_v45 }
 0x258   :  { %v734_v46 = vpop.eup %733 }
 0x259   :  { %v355_v47 = vsel %vm348_vm4, %v734_v46, 0.0 }
 0x25a   :  { %356 = vadd.xlane.f32.xlu1 %v355_v47 }
 0x25c   :  { %v736_v48 = vpop.eup %735 }
 0x25d   :  { %v518_v49 = vsel %vm348_vm4, %v736_v48, 0.0 }
 0x25e   :  { %519 = vadd.xlane.f32.xlu1 %v518_v49 }
 0x2e7   :  { %v357_v50 = vpop.xlane.xlu1 %356 }
 0x2e8   :  { %737 = vrcp.f32 %v357_v50 }
 0x2eb   :  { %v520_v51 = vpop.xlane.xlu1 %519 }
 0x2ec   :  { %739 = vrcp.f32 %v520_v51 }
 0x2f2   :  { %v738_v52 = vpop.eup %737 }
 0x2f3   :  { %v359_v53 = vmul.f32 %v738_v52, %v734_v46 }
 0x2f5   :  { %692 = vmatmul.mubr.msk.f32.vlgmr.msra.gmra.mrb[4].mxu1 %vm348_vm4, %v359_v53 }
 0x2f6   :  { %v740_v54 = vpop.eup %739  ;;  %700 = vmatpush3.msra.mxu1 %v683_v25  ;;  %701 = vmatprep.mubr.msk.f32.mxu1 %vm766_vm1, %v765_v20 }
 0x2f7   :  { %v522_v55 = vmul.f32 %v740_v54, %v736_v48 }
 0x2f9   :  { %702 = vmatmul.mubr.msk.f32.vlgmr.msra.gmra.mrb[6].mxu1 %vm348_vm4, %v522_v55 }
 0x3c8   :  { %v429_v56 = vpop.f32.mrb[4].mxu1 }
 0x3c9   :  { %433 = vst.msk [vmem:[#allocation2] sm:$0xff] %vm269_vm2, %v429_v56  ;;  %v693_v57 = vpop.f32.mrb[5].mxu1 }
 0x3cc   :  { %v592_v58 = vpop.f32.mrb[6].mxu1 }
 0x3cd   :  { %596 = vst.msk [vmem:[#allocation2 + $0x8] sm:$0xff] %vm269_vm2, %v592_v58  ;;  %v703_v59 = vpop.f32.mrb[7].mxu1 }
 0x3ce   :  { %752 = shalt.err (!%p749_p4)
}
 0x3cf   :  { %s753_s18 = scalar_lea.hbm %s875_s4, 256 }
 0x3d0   :  { %p754_p5 = scmp.ne.s32.totalorder %s875_s4, %s753_s18  ;;  %p757_p6 = scmp.lt.u32.totalorder %s753_s18, %s875_s4 }
 0x3d2   :  { %p759_p7 = pnand %p757_p6, %p754_p5 }
 0x3d4   :  { %762 = shalt.err (!%p759_p7)
}
 0x3d5   :  { %s768_s23 = smov 128   ;;  %s769_s24 = smov 8  }
 0x3d6   :  { %608 = dma.vmem_to_hbm [thread:$0]  %s603_s3, 256, %s875_s4, [#allocation3], %s768_s23, %s768_s23, %s769_s24  }
 0x3d7   :  { %763 = dma.done.wait [#allocation3], 256  }
 0x3d8   :  { %764 = vsyncadd [#allocation3], 4294967040 }
 0x3d9   :  { %612 = vsyncpa [#allocation3], 1 }

</bundles_post_ra>
